<compile_context>
chip_gen: v5e
topology: v5e:2x2
jax: 0.10.0
libtpu: 0.0.40
codegen_flags: <defaults>
</compile_context>

<pallas_src>
import jax
import jax.numpy as jnp
from jax.experimental import pallas as pl
from jax.experimental.pallas import tpu as pltpu

F32 = jnp.float32
BF16 = jnp.bfloat16


def _silu(x):
    # exp -> EUP, approx reciprocal -> EUP; only the mul/add stay on the VPU.
    return x * pl.reciprocal(1.0 + jnp.exp(-x), approx=True)


def node_extraction_basic(node_features, edge_radial, edge_angular, edge_index,
                          atom_idx, mp_params, head_params, n_layers, n_orb):
    # The reference PyTorch loop feeds the ORIGINAL node features into every
    # message-passing iteration and only keeps the last result, so n_layers
    # iterations are exactly equivalent to a single pass.
    assert n_layers >= 1, "n_layers must be >= 1 (matches the reference module)"

    N, Dn = node_features.shape
    E = edge_index.shape[1]
    De = edge_radial.shape[1] + edge_angular.shape[1]
    T, _, Hex = head_params["W1"].shape
    O2 = head_params["W3"].shape[2]
    Hmp = mp_params["eW1a"].shape[1]
    assert O2 == n_orb * n_orb
    # TODO(synk): heterogeneous per-atom-type orbital counts (ragged head output
    # dims) are not supported; all heads are assumed to emit n_orb x n_orb.

    p, hp = mp_params, head_params

    # ------------- wrapper-side weight re-layout (pure layout, no math) -------
    # Reassociated gather-through-weights: pre-multiply node features by the
    # first-layer weight rows once; per-edge gathers act on the products.
    pWsrc = p["eW1a"].astype(BF16)                                        # [Dn, Hmp]
    pWdst = jnp.concatenate([p["eW1b"], p["nW1a"]], axis=1).astype(BF16)  # [Dn, 2*Hmp]

    # All T heads in one pass: W1 stacked along output dim (lane-dense T*Hex),
    # W2 block-diagonal, W3 vertically stacked (selection via h2 block masking).
    W1s = jnp.transpose(hp["W1"], (1, 0, 2)).reshape(Dn, T * Hex).astype(BF16)
    b1s = hp["b1"].reshape(1, T * Hex).astype(F32)
    W2bd = jnp.zeros((T * Hex, T * Hex), F32)
    for t in range(T):
        W2bd = W2bd.at[t * Hex:(t + 1) * Hex, t * Hex:(t + 1) * Hex].set(hp["W2"][t])
    W2bd = W2bd.astype(BF16)
    b2s = hp["b2"].reshape(1, T * Hex).astype(F32)
    W3v = hp["W3"].reshape(T * Hex, O2).astype(BF16)
    b3st = hp["b3"].reshape(T, O2).astype(F32)

    ef = jnp.concatenate([edge_radial, edge_angular], axis=-1).astype(F32)
    src_col = edge_index[0].astype(jnp.int32).reshape(E, 1)
    dst_col = edge_index[1].astype(jnp.int32).reshape(E, 1)
    dst_row = edge_index[1].astype(jnp.int32).reshape(1, E)
    atom_col = atom_idx.astype(jnp.int32).reshape(N, 1)

    args = (src_col, dst_col, dst_row, atom_col,
            node_features.astype(F32), ef,
            pWsrc, pWdst, p["eW1c"].astype(BF16), p["eb1"].astype(F32),
            p["eW2"].astype(BF16), p["eb2"].astype(F32),
            p["eW3"].astype(BF16), p["eb3"].astype(F32),
            p["nW1b"].astype(BF16), p["nb1"].astype(F32),
            p["nW2"].astype(BF16), p["nb2"].astype(F32),
            W1s, b1s, W2bd, b2s, W3v, b3st)

    # ------------------------- fused kernel (one invocation) ------------------
    def kernel(src_col_ref, dst_col_ref, dst_row_ref, atom_col_ref,
               node_ref, ef_ref,
               pWsrc_ref, pWdst_ref, eW1c_ref, eb1_ref,
               eW2_ref, eb2_ref, eW3_ref, eb3_ref,
               nW1b_ref, nb1_ref, nW2_ref, nb2_ref,
               hW1_ref, hb1_ref, hW2_ref, hb2_ref, hW3_ref, hb3_ref,
               out_ref):
        node = node_ref[...]                                   # [N, Dn] f32
        ef_f = ef_ref[...]                                     # [E, De] f32
        node_b = node.astype(BF16)

        # node @ W first (one K=Dn matmul), one-hot gathers act on the product.
        pre_src = jnp.dot(node_b, pWsrc_ref[...], preferred_element_type=F32)   # [N, Hmp]
        pre_dst = jnp.dot(node_b, pWdst_ref[...], preferred_element_type=F32)   # [N, 2*Hmp]

        iota_en = jax.lax.broadcasted_iota(jnp.int32, (E, N), 1)
        g_src = (src_col_ref[...] == iota_en).astype(BF16)     # [E, N] 0/1 (exact in bf16)
        g_dst = (dst_col_ref[...] == iota_en).astype(BF16)

        src_h = jnp.dot(g_src, pre_src.astype(BF16), preferred_element_type=F32)  # [E, Hmp]
        dst_h = jnp.dot(g_dst, pre_dst.astype(BF16), preferred_element_type=F32)  # [E, 2*Hmp]

        ef_b = ef_f.astype(BF16)
        # edge_update MLP (layer-1 concat replaced by the weight split) + residual
        h = _silu(src_h + dst_h[:, :Hmp]
                  + jnp.dot(ef_b, eW1c_ref[...], preferred_element_type=F32)
                  + eb1_ref[...])
        h = _silu(jnp.dot(h.astype(BF16), eW2_ref[...], preferred_element_type=F32)
                  + eb2_ref[...])
        e_upd = (jnp.dot(h.astype(BF16), eW3_ref[...], preferred_element_type=F32)
                 + eb3_ref[...] + ef_f)                                            # [E, De]

        # per-edge node messages: node_update(cat(node[dst], e_upd))
        m = _silu(dst_h[:, Hmp:]
                  + jnp.dot(e_upd.astype(BF16), nW1b_ref[...], preferred_element_type=F32)
                  + nb1_ref[...])
        msgs = (jnp.dot(m.astype(BF16), nW2_ref[...], preferred_element_type=F32)
                + nb2_ref[...])                                                    # [E, Dn]

        # scatter-add to destination nodes, exact mean by clamped in-degree, residual
        iota_ne = jax.lax.broadcasted_iota(jnp.int32, (N, E), 0)
        s_dst = dst_row_ref[...] == iota_ne                                        # [N, E]
        agg = jnp.dot(s_dst.astype(BF16), msgs.astype(BF16),
                      preferred_element_type=F32)                                  # [N, Dn]
        deg = jnp.sum(s_dst.astype(F32), axis=1, keepdims=True)
        upd = agg / jnp.maximum(deg, 1.0) + node                                   # exact divide

        # ---------------- all T extraction heads in one lane-dense pass --------
        a = atom_col_ref[...]                                                      # [N, 1] int32
        h1 = _silu(jnp.dot(upd.astype(BF16), hW1_ref[...],
                           preferred_element_type=F32) + hb1_ref[...])             # [N, T*Hex]
        h2 = _silu(jnp.dot(h1.astype(BF16), hW2_ref[...],
                           preferred_element_type=F32) + hb2_ref[...])             # [N, T*Hex]

        # per-node head selection: zero every Hex-block except the atom-type's,
        # then one vstacked-W3 matmul yields the selected head's output directly.
        col = jax.lax.broadcasted_iota(jnp.int32, (N, T * Hex), 1)
        blk_mask = ((col >= a * Hex) & (col < (a + 1) * Hex)).astype(F32)
        h2m = (h2 * blk_mask).astype(BF16)

        b3sel = jnp.zeros((N, O2), F32)                     # per-node selected bias
        for t in range(T):
            b3sel = jnp.where(a == t, hb3_ref[pl.ds(t, 1), :], b3sel)
        o_sel = jnp.dot(h2m, hW3_ref[...], preferred_element_type=F32) + b3sel     # [N, O2]
        # Note: atoms with atom_idx outside [0, T) produce all-zero rows.

        # lane-dense output slab: flatten [N, O2] -> (1, N*O2) with lane-concat +
        # row mask + sublane reduce (no in-kernel reshape/relayout).
        tiled = jnp.concatenate([o_sel] * N, axis=1)                               # [N, N*O2]
        rr = jax.lax.broadcasted_iota(jnp.int32, (N, N * O2), 0)
        cc = jax.lax.broadcasted_iota(jnp.int32, (N, N * O2), 1)
        keep = (cc >= rr * O2) & (cc < (rr + 1) * O2)
        out_ref[...] = jnp.sum(jnp.where(keep, tiled, 0.0), axis=0, keepdims=True)

    def full_spec(arr):
        nd = arr.ndim
        return pl.BlockSpec(arr.shape, lambda i, _nd=nd: (0,) * _nd)

    in_specs = [full_spec(x) for x in args]

    flops = 2 * (N * Dn * 3 * Hmp + E * N * 3 * Hmp + E * De * Hmp
                 + E * Hmp * Hmp + E * Hmp * De + E * De * Hmp + E * Hmp * Dn
                 + N * E * Dn + N * Dn * T * Hex + N * (T * Hex) ** 2
                 + N * T * Hex * O2)
    bytes_accessed = int(sum(int(x.size) * x.dtype.itemsize for x in args) + 4 * N * O2)
    cost = pl.CostEstimate(flops=int(flops),
                           transcendentals=int(3 * E * Hmp + 2 * N * T * Hex),
                           bytes_accessed=bytes_accessed)

    flat = pl.pallas_call(
        kernel,
        out_shape=jax.ShapeDtypeStruct((1, N * O2), F32),
        grid_spec=pltpu.PrefetchScalarGridSpec(
            num_scalar_prefetch=0,
            grid=(1,),
            in_specs=in_specs,
            out_specs=pl.BlockSpec((1, N * O2), lambda i: (0, 0)),
        ),
        compiler_params=pltpu.CompilerParams(
            dimension_semantics=("arbitrary",),
            vmem_limit_bytes=32 * 1024 * 1024),
        cost_estimate=cost,
    )(*args)
    return flat.reshape(N, n_orb, n_orb)


# ----------------------------------------------------------------------------
# Pure-JAX f32 reference (exact math, for a sanity check)
# ----------------------------------------------------------------------------
def _reference(node_features, edge_radial, edge_angular, edge_index,
               atom_idx, p, hp, n_orb):
    ef = jnp.concatenate([edge_radial, edge_angular], -1)
    src, dst = edge_index
    N = node_features.shape[0]
    h = jax.nn.silu(node_features[src] @ p["eW1a"] + node_features[dst] @ p["eW1b"]
                    + ef @ p["eW1c"] + p["eb1"])
    h = jax.nn.silu(h @ p["eW2"] + p["eb2"])
    e_upd = h @ p["eW3"] + p["eb3"] + ef
    m = jax.nn.silu(node_features[dst] @ p["nW1a"] + e_upd @ p["nW1b"] + p["nb1"])
    msgs = m @ p["nW2"] + p["nb2"]
    agg = jax.ops.segment_sum(msgs, dst, N)
    deg = jnp.maximum(
        jax.ops.segment_sum(jnp.ones((dst.shape[0],), jnp.float32), dst, N), 1.0)
    upd = agg / deg[:, None] + node_features
    outs = []
    for t in range(hp["W1"].shape[0]):
        hh = jax.nn.silu(upd @ hp["W1"][t] + hp["b1"][t])
        hh = jax.nn.silu(hh @ hp["W2"][t] + hp["b2"][t])
        outs.append(hh @ hp["W3"][t] + hp["b3"][t])
    outs = jnp.stack(outs)                               # [T, N, O2]
    sel = outs[atom_idx, jnp.arange(N)]                  # [N, O2]
    return sel.reshape(N, n_orb, n_orb)


if __name__ == "__main__":
    # config: 2 atom types x 4 orbitals each; descriptor_dim=32,
    # edge_radial_dim=edge_angular_dim=16, hidden dims = 64, n_layers = 1.
    N, E = 8, 16
    Dn, Dr, Da = 32, 16, 16
    De = Dr + Da
    Hmp, Hex = 64, 64
    T, n_orb = 2, 4
    O2 = n_orb * n_orb
    n_layers = 1

    key = jax.random.PRNGKey(0)
    ks = jax.random.split(key, 24)

    def lin(k, fan_in, fan_out):
        return jax.random.normal(k, (fan_in, fan_out), jnp.float32) / jnp.sqrt(fan_in)

    # MessagePassing parameters; first layers stored pre-split by input block so
    # the kernel never materializes the concatenated edge_inputs / message vectors.
    mp_params = {
        "eW1a": lin(ks[0], Dn, Hmp),   # src-feature rows of edge_update layer 1
        "eW1b": lin(ks[1], Dn, Hmp),   # dst-feature rows
        "eW1c": lin(ks[2], De, Hmp),   # edge-feature rows
        "eb1": jnp.zeros((1, Hmp), jnp.float32) + 0.01,
        "eW2": lin(ks[3], Hmp, Hmp), "eb2": jnp.zeros((1, Hmp), jnp.float32) + 0.01,
        "eW3": lin(ks[4], Hmp, De),  "eb3": jnp.zeros((1, De), jnp.float32) + 0.01,
        "nW1a": lin(ks[5], Dn, Hmp),   # node-feature rows of node_update layer 1
        "nW1b": lin(ks[6], De, Hmp),   # edge-feature rows
        "nb1": jnp.zeros((1, Hmp), jnp.float32) + 0.01,
        "nW2": lin(ks[7], Hmp, Dn),  "nb2": jnp.zeros((1, Dn), jnp.float32) + 0.01,
    }

    # Per-atom-type extraction heads (stacked over type axis T)
    head_params = {
        "W1": jnp.stack([lin(ks[8 + t], Dn, Hex) for t in range(T)]),
        "b1": jnp.zeros((T, 1, Hex), jnp.float32) + 0.01,
        "W2": jnp.stack([lin(ks[10 + t], Hex, Hex) for t in range(T)]),
        "b2": jnp.zeros((T, 1, Hex), jnp.float32) + 0.01,
        "W3": jnp.stack([lin(ks[12 + t], Hex, O2) for t in range(T)]),
        "b3": jnp.zeros((T, 1, O2), jnp.float32) + 0.01,
    }

    # Inputs (graph_data, embeddings, atomic_env_descriptor equivalents)
    node_features = jax.random.normal(ks[14], (N, Dn), jnp.float32)
    edge_radial = jax.random.normal(ks[15], (E, Dr), jnp.float32)
    edge_angular = jax.random.normal(ks[16], (E, Da), jnp.float32)
    edge_index = jax.random.randint(ks[17], (2, E), 0, N, jnp.int32)
    atom_idx = jax.random.randint(ks[18], (N,), 0, T, jnp.int32)   # graph_data.x

    out = node_extraction_basic(node_features, edge_radial, edge_angular,
                                edge_index, atom_idx, mp_params, head_params,
                                n_layers, n_orb)
    out = jax.block_until_ready(out)

    ref = _reference(node_features, edge_radial, edge_angular, edge_index,
                     atom_idx, mp_params, head_params, n_orb)
    assert out.shape == (N, n_orb, n_orb)
    # Kernel uses bf16 MXU operands (f32 accumulation); reference is pure f32,
    # so allow a modest tolerance.
    assert jnp.allclose(out, ref, atol=1e-1, rtol=1e-1)

    print("KERNEL_OK")
</pallas_src>

<mosaic_0001>
module attributes {stable_mosaic.version = 11 : i64} {
  func.func @kernel(%arg0: i32, %arg1: memref<16x1xi32, #tpu.memory_space<vmem>>, %arg2: memref<16x1xi32, #tpu.memory_space<vmem>>, %arg3: memref<1x16xi32, #tpu.memory_space<vmem>>, %arg4: memref<8x1xi32, #tpu.memory_space<vmem>>, %arg5: memref<8x32xf32, #tpu.memory_space<vmem>>, %arg6: memref<16x32xf32, #tpu.memory_space<vmem>>, %arg7: memref<32x64xbf16, #tpu.memory_space<vmem>>, %arg8: memref<32x128xbf16, #tpu.memory_space<vmem>>, %arg9: memref<32x64xbf16, #tpu.memory_space<vmem>>, %arg10: memref<1x64xf32, #tpu.memory_space<vmem>>, %arg11: memref<64x64xbf16, #tpu.memory_space<vmem>>, %arg12: memref<1x64xf32, #tpu.memory_space<vmem>>, %arg13: memref<64x32xbf16, #tpu.memory_space<vmem>>, %arg14: memref<1x32xf32, #tpu.memory_space<vmem>>, %arg15: memref<32x64xbf16, #tpu.memory_space<vmem>>, %arg16: memref<1x64xf32, #tpu.memory_space<vmem>>, %arg17: memref<64x32xbf16, #tpu.memory_space<vmem>>, %arg18: memref<1x32xf32, #tpu.memory_space<vmem>>, %arg19: memref<32x128xbf16, #tpu.memory_space<vmem>>, %arg20: memref<1x128xf32, #tpu.memory_space<vmem>>, %arg21: memref<128x128xbf16, #tpu.memory_space<vmem>>, %arg22: memref<1x128xf32, #tpu.memory_space<vmem>>, %arg23: memref<128x16xbf16, #tpu.memory_space<vmem>>, %arg24: memref<2x16xf32, #tpu.memory_space<vmem>>, %arg25: memref<1x128xf32, #tpu.memory_space<vmem>>) attributes {dimension_semantics = [#tpu.dimension_semantics<arbitrary>], iteration_bounds = array<i64: 1>, scalar_prefetch = 0 : i64, scratch_operands = 0 : i64, tpu.core_type = #tpu.core_type<tc>, window_params = [{pipeline_mode = #tpu.pipeline_mode<synchronous>, transform_indices = @transform_0, window_bounds = array<i64: 16, 1>}, {pipeline_mode = #tpu.pipeline_mode<synchronous>, transform_indices = @transform_1, window_bounds = array<i64: 16, 1>}, {pipeline_mode = #tpu.pipeline_mode<synchronous>, transform_indices = @transform_2, window_bounds = array<i64: 1, 16>}, {pipeline_mode = #tpu.pipeline_mode<synchronous>, transform_indices = @transform_3, window_bounds = array<i64: 8, 1>}, {pipeline_mode = #tpu.pipeline_mode<synchronous>, transform_indices = @transform_4, window_bounds = array<i64: 8, 32>}, {pipeline_mode = #tpu.pipeline_mode<synchronous>, transform_indices = @transform_5, window_bounds = array<i64: 16, 32>}, {pipeline_mode = #tpu.pipeline_mode<synchronous>, transform_indices = @transform_6, window_bounds = array<i64: 32, 64>}, {pipeline_mode = #tpu.pipeline_mode<synchronous>, transform_indices = @transform_7, window_bounds = array<i64: 32, 128>}, {pipeline_mode = #tpu.pipeline_mode<synchronous>, transform_indices = @transform_8, window_bounds = array<i64: 32, 64>}, {pipeline_mode = #tpu.pipeline_mode<synchronous>, transform_indices = @transform_9, window_bounds = array<i64: 1, 64>}, {pipeline_mode = #tpu.pipeline_mode<synchronous>, transform_indices = @transform_10, window_bounds = array<i64: 64, 64>}, {pipeline_mode = #tpu.pipeline_mode<synchronous>, transform_indices = @transform_11, window_bounds = array<i64: 1, 64>}, {pipeline_mode = #tpu.pipeline_mode<synchronous>, transform_indices = @transform_12, window_bounds = array<i64: 64, 32>}, {pipeline_mode = #tpu.pipeline_mode<synchronous>, transform_indices = @transform_13, window_bounds = array<i64: 1, 32>}, {pipeline_mode = #tpu.pipeline_mode<synchronous>, transform_indices = @transform_14, window_bounds = array<i64: 32, 64>}, {pipeline_mode = #tpu.pipeline_mode<synchronous>, transform_indices = @transform_15, window_bounds = array<i64: 1, 64>}, {pipeline_mode = #tpu.pipeline_mode<synchronous>, transform_indices = @transform_16, window_bounds = array<i64: 64, 32>}, {pipeline_mode = #tpu.pipeline_mode<synchronous>, transform_indices = @transform_17, window_bounds = array<i64: 1, 32>}, {pipeline_mode = #tpu.pipeline_mode<synchronous>, transform_indices = @transform_18, window_bounds = array<i64: 32, 128>}, {pipeline_mode = #tpu.pipeline_mode<synchronous>, transform_indices = @transform_19, window_bounds = array<i64: 1, 128>}, {pipeline_mode = #tpu.pipeline_mode<synchronous>, transform_indices = @transform_20, window_bounds = array<i64: 128, 128>}, {pipeline_mode = #tpu.pipeline_mode<synchronous>, transform_indices = @transform_21, window_bounds = array<i64: 1, 128>}, {pipeline_mode = #tpu.pipeline_mode<synchronous>, transform_indices = @transform_22, window_bounds = array<i64: 128, 16>}, {pipeline_mode = #tpu.pipeline_mode<synchronous>, transform_indices = @transform_23, window_bounds = array<i64: 2, 16>}, {pipeline_mode = #tpu.pipeline_mode<synchronous>, transform_indices = @transform_24, window_bounds = array<i64: 1, 128>}]} {
    %c0 = arith.constant 0 : index
    %c0_0 = arith.constant 0 : index
    %0 = vector.load %arg5[%c0, %c0_0] : memref<8x32xf32, #tpu.memory_space<vmem>>, vector<8x32xf32>
    %c0_1 = arith.constant 0 : index
    %c0_2 = arith.constant 0 : index
    %1 = vector.load %arg6[%c0_1, %c0_2] : memref<16x32xf32, #tpu.memory_space<vmem>>, vector<16x32xf32>
    %2 = arith.truncf %0 : vector<8x32xf32> to vector<8x32xbf16>
    %c0_3 = arith.constant 0 : index
    %c0_4 = arith.constant 0 : index
    %3 = vector.load %arg7[%c0_3, %c0_4] : memref<32x64xbf16, #tpu.memory_space<vmem>>, vector<32x64xbf16>
    %cst = arith.constant dense<0.000000e+00> : vector<8x64xf32>
    %4 = tpu.matmul %2, %3, %cst {dimension_numbers = #tpu.dot_dimension_numbers<[1], [0], [0], [1], [0, 0, 1, 1], [], []>} : vector<8x32xbf16>, vector<32x64xbf16>, vector<8x64xf32> -> vector<8x64xf32>
    %c0_5 = arith.constant 0 : index
    %c0_6 = arith.constant 0 : index
    %5 = vector.load %arg8[%c0_5, %c0_6] : memref<32x128xbf16, #tpu.memory_space<vmem>>, vector<32x128xbf16>
    %cst_7 = arith.constant dense<0.000000e+00> : vector<8x128xf32>
    %6 = tpu.matmul %2, %5, %cst_7 {dimension_numbers = #tpu.dot_dimension_numbers<[1], [0], [0], [1], [0, 0, 1, 1], [], []>} : vector<8x32xbf16>, vector<32x128xbf16>, vector<8x128xf32> -> vector<8x128xf32>
    %7 = tpu.iota {dimensions = array<i32: 1>} : vector<16x8xi32>
    %c0_8 = arith.constant 0 : index
    %c0_9 = arith.constant 0 : index
    %8 = vector.load %arg1[%c0_8, %c0_9] : memref<16x1xi32, #tpu.memory_space<vmem>>, vector<16x1xi32>
    %9 = vector.broadcast %8 : vector<16x1xi32> to vector<16x8xi32>
    %10 = arith.cmpi eq, %9, %7 : vector<16x8xi32>
    %11 = arith.extui %10 : vector<16x8xi1> to vector<16x8xi32>
    %12 = arith.sitofp %11 : vector<16x8xi32> to vector<16x8xf32>
    %13 = arith.truncf %12 : vector<16x8xf32> to vector<16x8xbf16>
    %c0_10 = arith.constant 0 : index
    %c0_11 = arith.constant 0 : index
    %14 = vector.load %arg2[%c0_10, %c0_11] : memref<16x1xi32, #tpu.memory_space<vmem>>, vector<16x1xi32>
    %15 = vector.broadcast %14 : vector<16x1xi32> to vector<16x8xi32>
    %16 = arith.cmpi eq, %15, %7 : vector<16x8xi32>
    %17 = arith.extui %16 : vector<16x8xi1> to vector<16x8xi32>
    %18 = arith.sitofp %17 : vector<16x8xi32> to vector<16x8xf32>
    %19 = arith.truncf %18 : vector<16x8xf32> to vector<16x8xbf16>
    %20 = arith.truncf %4 : vector<8x64xf32> to vector<8x64xbf16>
    %cst_12 = arith.constant dense<0.000000e+00> : vector<16x64xf32>
    %21 = tpu.matmul %13, %20, %cst_12 {dimension_numbers = #tpu.dot_dimension_numbers<[1], [0], [0], [1], [0, 0, 1, 1], [], []>} : vector<16x8xbf16>, vector<8x64xbf16>, vector<16x64xf32> -> vector<16x64xf32>
    %22 = arith.truncf %6 : vector<8x128xf32> to vector<8x128xbf16>
    %cst_13 = arith.constant dense<0.000000e+00> : vector<16x128xf32>
    %23 = tpu.matmul %19, %22, %cst_13 {dimension_numbers = #tpu.dot_dimension_numbers<[1], [0], [0], [1], [0, 0, 1, 1], [], []>} : vector<16x8xbf16>, vector<8x128xbf16>, vector<16x128xf32> -> vector<16x128xf32>
    %24 = arith.truncf %1 : vector<16x32xf32> to vector<16x32xbf16>
    %25 = vector.extract_strided_slice %23 {offsets = [0, 0], sizes = [16, 64], strides = [1, 1]} : vector<16x128xf32> to vector<16x64xf32>
    %26 = arith.addf %21, %25 : vector<16x64xf32>
    %c0_14 = arith.constant 0 : index
    %c0_15 = arith.constant 0 : index
    %27 = vector.load %arg9[%c0_14, %c0_15] : memref<32x64xbf16, #tpu.memory_space<vmem>>, vector<32x64xbf16>
    %cst_16 = arith.constant dense<0.000000e+00> : vector<16x64xf32>
    %28 = tpu.matmul %24, %27, %cst_16 {dimension_numbers = #tpu.dot_dimension_numbers<[1], [0], [0], [1], [0, 0, 1, 1], [], []>} : vector<16x32xbf16>, vector<32x64xbf16>, vector<16x64xf32> -> vector<16x64xf32>
    %29 = arith.addf %26, %28 : vector<16x64xf32>
    %c0_17 = arith.constant 0 : index
    %c0_18 = arith.constant 0 : index
    %30 = vector.load %arg10[%c0_17, %c0_18] : memref<1x64xf32, #tpu.memory_space<vmem>>, vector<1x64xf32>
    %31 = vector.broadcast %30 : vector<1x64xf32> to vector<16x64xf32>
    %32 = arith.addf %29, %31 : vector<16x64xf32>
    %cst_19 = arith.constant 0.000000e+00 : f32
    %33 = vector.broadcast %cst_19 : f32 to vector<16x64xf32>
    %34 = arith.subf %33, %32 : vector<16x64xf32>
    %35 = math.exp %34 : vector<16x64xf32>
    %cst_20 = arith.constant 1.000000e+00 : f32
    %36 = vector.broadcast %cst_20 : f32 to vector<16x64xf32>
    %37 = arith.addf %36, %35 : vector<16x64xf32>
    %38 = tpu.reciprocal %37 {approx = true} : vector<16x64xf32> -> vector<16x64xf32>
    %39 = arith.mulf %32, %38 : vector<16x64xf32>
    %40 = arith.truncf %39 : vector<16x64xf32> to vector<16x64xbf16>
    %c0_21 = arith.constant 0 : index
    %c0_22 = arith.constant 0 : index
    %41 = vector.load %arg11[%c0_21, %c0_22] : memref<64x64xbf16, #tpu.memory_space<vmem>>, vector<64x64xbf16>
    %cst_23 = arith.constant dense<0.000000e+00> : vector<16x64xf32>
    %42 = tpu.matmul %40, %41, %cst_23 {dimension_numbers = #tpu.dot_dimension_numbers<[1], [0], [0], [1], [0, 0, 1, 1], [], []>} : vector<16x64xbf16>, vector<64x64xbf16>, vector<16x64xf32> -> vector<16x64xf32>
    %c0_24 = arith.constant 0 : index
    %c0_25 = arith.constant 0 : index
    %43 = vector.load %arg12[%c0_24, %c0_25] : memref<1x64xf32, #tpu.memory_space<vmem>>, vector<1x64xf32>
    %44 = vector.broadcast %43 : vector<1x64xf32> to vector<16x64xf32>
    %45 = arith.addf %42, %44 : vector<16x64xf32>
    %cst_26 = arith.constant 0.000000e+00 : f32
    %46 = vector.broadcast %cst_26 : f32 to vector<16x64xf32>
    %47 = arith.subf %46, %45 : vector<16x64xf32>
    %48 = math.exp %47 : vector<16x64xf32>
    %cst_27 = arith.constant 1.000000e+00 : f32
    %49 = vector.broadcast %cst_27 : f32 to vector<16x64xf32>
    %50 = arith.addf %49, %48 : vector<16x64xf32>
    %51 = tpu.reciprocal %50 {approx = true} : vector<16x64xf32> -> vector<16x64xf32>
    %52 = arith.mulf %45, %51 : vector<16x64xf32>
    %53 = arith.truncf %52 : vector<16x64xf32> to vector<16x64xbf16>
    %c0_28 = arith.constant 0 : index
    %c0_29 = arith.constant 0 : index
    %54 = vector.load %arg13[%c0_28, %c0_29] : memref<64x32xbf16, #tpu.memory_space<vmem>>, vector<64x32xbf16>
    %cst_30 = arith.constant dense<0.000000e+00> : vector<16x32xf32>
    %55 = tpu.matmul %53, %54, %cst_30 {dimension_numbers = #tpu.dot_dimension_numbers<[1], [0], [0], [1], [0, 0, 1, 1], [], []>} : vector<16x64xbf16>, vector<64x32xbf16>, vector<16x32xf32> -> vector<16x32xf32>
    %c0_31 = arith.constant 0 : index
    %c0_32 = arith.constant 0 : index
    %56 = vector.load %arg14[%c0_31, %c0_32] : memref<1x32xf32, #tpu.memory_space<vmem>>, vector<1x32xf32>
    %57 = vector.broadcast %56 : vector<1x32xf32> to vector<16x32xf32>
    %58 = arith.addf %55, %57 : vector<16x32xf32>
    %59 = arith.addf %58, %1 : vector<16x32xf32>
    %60 = vector.extract_strided_slice %23 {offsets = [0, 64], sizes = [16, 64], strides = [1, 1]} : vector<16x128xf32> to vector<16x64xf32>
    %61 = arith.truncf %59 : vector<16x32xf32> to vector<16x32xbf16>
    %c0_33 = arith.constant 0 : index
    %c0_34 = arith.constant 0 : index
    %62 = vector.load %arg15[%c0_33, %c0_34] : memref<32x64xbf16, #tpu.memory_space<vmem>>, vector<32x64xbf16>
    %cst_35 = arith.constant dense<0.000000e+00> : vector<16x64xf32>
    %63 = tpu.matmul %61, %62, %cst_35 {dimension_numbers = #tpu.dot_dimension_numbers<[1], [0], [0], [1], [0, 0, 1, 1], [], []>} : vector<16x32xbf16>, vector<32x64xbf16>, vector<16x64xf32> -> vector<16x64xf32>
    %64 = arith.addf %60, %63 : vector<16x64xf32>
    %c0_36 = arith.constant 0 : index
    %c0_37 = arith.constant 0 : index
    %65 = vector.load %arg16[%c0_36, %c0_37] : memref<1x64xf32, #tpu.memory_space<vmem>>, vector<1x64xf32>
    %66 = vector.broadcast %65 : vector<1x64xf32> to vector<16x64xf32>
    %67 = arith.addf %64, %66 : vector<16x64xf32>
    %cst_38 = arith.constant 0.000000e+00 : f32
    %68 = vector.broadcast %cst_38 : f32 to vector<16x64xf32>
    %69 = arith.subf %68, %67 : vector<16x64xf32>
    %70 = math.exp %69 : vector<16x64xf32>
    %cst_39 = arith.constant 1.000000e+00 : f32
    %71 = vector.broadcast %cst_39 : f32 to vector<16x64xf32>
    %72 = arith.addf %71, %70 : vector<16x64xf32>
    %73 = tpu.reciprocal %72 {approx = true} : vector<16x64xf32> -> vector<16x64xf32>
    %74 = arith.mulf %67, %73 : vector<16x64xf32>
    %75 = arith.truncf %74 : vector<16x64xf32> to vector<16x64xbf16>
    %c0_40 = arith.constant 0 : index
    %c0_41 = arith.constant 0 : index
    %76 = vector.load %arg17[%c0_40, %c0_41] : memref<64x32xbf16, #tpu.memory_space<vmem>>, vector<64x32xbf16>
    %cst_42 = arith.constant dense<0.000000e+00> : vector<16x32xf32>
    %77 = tpu.matmul %75, %76, %cst_42 {dimension_numbers = #tpu.dot_dimension_numbers<[1], [0], [0], [1], [0, 0, 1, 1], [], []>} : vector<16x64xbf16>, vector<64x32xbf16>, vector<16x32xf32> -> vector<16x32xf32>
    %c0_43 = arith.constant 0 : index
    %c0_44 = arith.constant 0 : index
    %78 = vector.load %arg18[%c0_43, %c0_44] : memref<1x32xf32, #tpu.memory_space<vmem>>, vector<1x32xf32>
    %79 = vector.broadcast %78 : vector<1x32xf32> to vector<16x32xf32>
    %80 = arith.addf %77, %79 : vector<16x32xf32>
    %81 = tpu.iota {dimensions = array<i32: 0>} : vector<8x16xi32>
    %c0_45 = arith.constant 0 : index
    %c0_46 = arith.constant 0 : index
    %82 = vector.load %arg3[%c0_45, %c0_46] : memref<1x16xi32, #tpu.memory_space<vmem>>, vector<1x16xi32>
    %83 = vector.broadcast %82 : vector<1x16xi32> to vector<8x16xi32>
    %84 = arith.cmpi eq, %83, %81 : vector<8x16xi32>
    %85 = arith.extui %84 : vector<8x16xi1> to vector<8x16xi32>
    %86 = arith.sitofp %85 : vector<8x16xi32> to vector<8x16xf32>
    %87 = arith.truncf %86 : vector<8x16xf32> to vector<8x16xbf16>
    %88 = arith.truncf %80 : vector<16x32xf32> to vector<16x32xbf16>
    %cst_47 = arith.constant dense<0.000000e+00> : vector<8x32xf32>
    %89 = tpu.matmul %87, %88, %cst_47 {dimension_numbers = #tpu.dot_dimension_numbers<[1], [0], [0], [1], [0, 0, 1, 1], [], []>} : vector<8x16xbf16>, vector<16x32xbf16>, vector<8x32xf32> -> vector<8x32xf32>
    %90 = arith.extui %84 : vector<8x16xi1> to vector<8x16xi32>
    %91 = arith.sitofp %90 : vector<8x16xi32> to vector<8x16xf32>
    %cst_48 = arith.constant dense<0.000000e+00> : vector<8xf32>
    %92 = vector.multi_reduction <add>, %91, %cst_48 [1] : vector<8x16xf32> to vector<8xf32>
    %93 = vector.shape_cast %92 : vector<8xf32> to vector<8x1xf32>
    %cst_49 = arith.constant 1.000000e+00 : f32
    %94 = vector.broadcast %cst_49 : f32 to vector<8x1xf32>
    %95 = arith.maximumf %93, %94 : vector<8x1xf32>
    %96 = vector.broadcast %95 : vector<8x1xf32> to vector<8x32xf32>
    %97 = arith.divf %89, %96 : vector<8x32xf32>
    %98 = arith.addf %97, %0 : vector<8x32xf32>
    %c0_50 = arith.constant 0 : index
    %c0_51 = arith.constant 0 : index
    %99 = vector.load %arg4[%c0_50, %c0_51] : memref<8x1xi32, #tpu.memory_space<vmem>>, vector<8x1xi32>
    %100 = arith.truncf %98 : vector<8x32xf32> to vector<8x32xbf16>
    %c0_52 = arith.constant 0 : index
    %c0_53 = arith.constant 0 : index
    %101 = vector.load %arg19[%c0_52, %c0_53] : memref<32x128xbf16, #tpu.memory_space<vmem>>, vector<32x128xbf16>
    %cst_54 = arith.constant dense<0.000000e+00> : vector<8x128xf32>
    %102 = tpu.matmul %100, %101, %cst_54 {dimension_numbers = #tpu.dot_dimension_numbers<[1], [0], [0], [1], [0, 0, 1, 1], [], []>} : vector<8x32xbf16>, vector<32x128xbf16>, vector<8x128xf32> -> vector<8x128xf32>
    %c0_55 = arith.constant 0 : index
    %c0_56 = arith.constant 0 : index
    %103 = vector.load %arg20[%c0_55, %c0_56] : memref<1x128xf32, #tpu.memory_space<vmem>>, vector<1x128xf32>
    %104 = vector.broadcast %103 : vector<1x128xf32> to vector<8x128xf32>
    %105 = arith.addf %102, %104 : vector<8x128xf32>
    %cst_57 = arith.constant 0.000000e+00 : f32
    %106 = vector.broadcast %cst_57 : f32 to vector<8x128xf32>
    %107 = arith.subf %106, %105 : vector<8x128xf32>
    %108 = math.exp %107 : vector<8x128xf32>
    %cst_58 = arith.constant 1.000000e+00 : f32
    %109 = vector.broadcast %cst_58 : f32 to vector<8x128xf32>
    %110 = arith.addf %109, %108 : vector<8x128xf32>
    %111 = tpu.reciprocal %110 {approx = true} : vector<8x128xf32> -> vector<8x128xf32>
    %112 = arith.mulf %105, %111 : vector<8x128xf32>
    %113 = arith.truncf %112 : vector<8x128xf32> to vector<8x128xbf16>
    %c0_59 = arith.constant 0 : index
    %c0_60 = arith.constant 0 : index
    %114 = vector.load %arg21[%c0_59, %c0_60] : memref<128x128xbf16, #tpu.memory_space<vmem>>, vector<128x128xbf16>
    %cst_61 = arith.constant dense<0.000000e+00> : vector<8x128xf32>
    %115 = tpu.matmul %113, %114, %cst_61 {dimension_numbers = #tpu.dot_dimension_numbers<[1], [0], [0], [1], [0, 0, 1, 1], [], []>} : vector<8x128xbf16>, vector<128x128xbf16>, vector<8x128xf32> -> vector<8x128xf32>
    %c0_62 = arith.constant 0 : index
    %c0_63 = arith.constant 0 : index
    %116 = vector.load %arg22[%c0_62, %c0_63] : memref<1x128xf32, #tpu.memory_space<vmem>>, vector<1x128xf32>
    %117 = vector.broadcast %116 : vector<1x128xf32> to vector<8x128xf32>
    %118 = arith.addf %115, %117 : vector<8x128xf32>
    %cst_64 = arith.constant 0.000000e+00 : f32
    %119 = vector.broadcast %cst_64 : f32 to vector<8x128xf32>
    %120 = arith.subf %119, %118 : vector<8x128xf32>
    %121 = math.exp %120 : vector<8x128xf32>
    %cst_65 = arith.constant 1.000000e+00 : f32
    %122 = vector.broadcast %cst_65 : f32 to vector<8x128xf32>
    %123 = arith.addf %122, %121 : vector<8x128xf32>
    %124 = tpu.reciprocal %123 {approx = true} : vector<8x128xf32> -> vector<8x128xf32>
    %125 = arith.mulf %118, %124 : vector<8x128xf32>
    %126 = tpu.iota {dimensions = array<i32: 1>} : vector<8x128xi32>
    %c64_i32 = arith.constant 64 : i32
    %127 = vector.broadcast %c64_i32 : i32 to vector<8x1xi32>
    %128 = arith.muli %99, %127 : vector<8x1xi32>
    %129 = vector.broadcast %128 : vector<8x1xi32> to vector<8x128xi32>
    %130 = arith.cmpi sge, %126, %129 : vector<8x128xi32>
    %c1_i32 = arith.constant 1 : i32
    %131 = vector.broadcast %c1_i32 : i32 to vector<8x1xi32>
    %132 = arith.addi %99, %131 : vector<8x1xi32>
    %c64_i32_66 = arith.constant 64 : i32
    %133 = vector.broadcast %c64_i32_66 : i32 to vector<8x1xi32>
    %134 = arith.muli %132, %133 : vector<8x1xi32>
    %135 = vector.broadcast %134 : vector<8x1xi32> to vector<8x128xi32>
    %136 = arith.cmpi slt, %126, %135 : vector<8x128xi32>
    %137 = arith.andi %130, %136 : vector<8x128xi1>
    %138 = arith.extui %137 : vector<8x128xi1> to vector<8x128xi32>
    %139 = arith.sitofp %138 : vector<8x128xi32> to vector<8x128xf32>
    %140 = arith.mulf %125, %139 : vector<8x128xf32>
    %141 = arith.truncf %140 : vector<8x128xf32> to vector<8x128xbf16>
    %cst_67 = arith.constant 0.000000e+00 : f32
    %142 = vector.broadcast %cst_67 : f32 to vector<8x16xf32>
    %c0_i32 = arith.constant 0 : i32
    %143 = vector.broadcast %c0_i32 : i32 to vector<8x1xi32>
    %144 = arith.cmpi eq, %99, %143 : vector<8x1xi32>
    %c0_68 = arith.constant 0 : index
    %c0_69 = arith.constant 0 : index
    %145 = vector.load %arg24[%c0_68, %c0_69] : memref<2x16xf32, #tpu.memory_space<vmem>>, vector<1x16xf32>
    %146 = vector.shape_cast %144 : vector<8x1xi1> to vector<8x1xi1>
    %147 = vector.broadcast %146 : vector<8x1xi1> to vector<8x16xi1>
    %148 = vector.shape_cast %145 : vector<1x16xf32> to vector<1x16xf32>
    %149 = vector.broadcast %148 : vector<1x16xf32> to vector<8x16xf32>
    %150 = arith.select %147, %149, %142 : vector<8x16xi1>, vector<8x16xf32>
    %c1_i32_70 = arith.constant 1 : i32
    %151 = vector.broadcast %c1_i32_70 : i32 to vector<8x1xi32>
    %152 = arith.cmpi eq, %99, %151 : vector<8x1xi32>
    %c1 = arith.constant 1 : index
    %c0_71 = arith.constant 0 : index
    %153 = vector.load %arg24[%c1, %c0_71] : memref<2x16xf32, #tpu.memory_space<vmem>>, vector<1x16xf32>
    %154 = vector.shape_cast %152 : vector<8x1xi1> to vector<8x1xi1>
    %155 = vector.broadcast %154 : vector<8x1xi1> to vector<8x16xi1>
    %156 = vector.shape_cast %153 : vector<1x16xf32> to vector<1x16xf32>
    %157 = vector.broadcast %156 : vector<1x16xf32> to vector<8x16xf32>
    %158 = arith.select %155, %157, %150 : vector<8x16xi1>, vector<8x16xf32>
    %c0_72 = arith.constant 0 : index
    %c0_73 = arith.constant 0 : index
    %159 = vector.load %arg23[%c0_72, %c0_73] : memref<128x16xbf16, #tpu.memory_space<vmem>>, vector<128x16xbf16>
    %cst_74 = arith.constant dense<0.000000e+00> : vector<8x16xf32>
    %160 = tpu.matmul %141, %159, %cst_74 {dimension_numbers = #tpu.dot_dimension_numbers<[1], [0], [0], [1], [0, 0, 1, 1], [], []>} : vector<8x128xbf16>, vector<128x16xbf16>, vector<8x16xf32> -> vector<8x16xf32>
    %161 = arith.addf %160, %158 : vector<8x16xf32>
    %162 = tpu.concatenate %161, %161, %161, %161, %161, %161, %161, %161 in 1 : vector<8x16xf32>, vector<8x16xf32>, vector<8x16xf32>, vector<8x16xf32>, vector<8x16xf32>, vector<8x16xf32>, vector<8x16xf32>, vector<8x16xf32> -> vector<8x128xf32>
    %163 = tpu.iota {dimensions = array<i32: 0>} : vector<8x128xi32>
    %164 = tpu.iota {dimensions = array<i32: 1>} : vector<8x128xi32>
    %c16_i32 = arith.constant 16 : i32
    %165 = vector.broadcast %c16_i32 : i32 to vector<8x128xi32>
    %166 = arith.muli %163, %165 : vector<8x128xi32>
    %167 = arith.cmpi sge, %164, %166 : vector<8x128xi32>
    %c1_i32_75 = arith.constant 1 : i32
    %168 = vector.broadcast %c1_i32_75 : i32 to vector<8x128xi32>
    %169 = arith.addi %163, %168 : vector<8x128xi32>
    %c16_i32_76 = arith.constant 16 : i32
    %170 = vector.broadcast %c16_i32_76 : i32 to vector<8x128xi32>
    %171 = arith.muli %169, %170 : vector<8x128xi32>
    %172 = arith.cmpi slt, %164, %171 : vector<8x128xi32>
    %173 = arith.andi %167, %172 : vector<8x128xi1>
    %cst_77 = arith.constant 0.000000e+00 : f32
    %174 = vector.broadcast %cst_77 : f32 to vector<8x128xf32>
    %175 = arith.select %173, %162, %174 : vector<8x128xi1>, vector<8x128xf32>
    %cst_78 = arith.constant dense<0.000000e+00> : vector<128xf32>
    %176 = vector.multi_reduction <add>, %175, %cst_78 [0] : vector<8x128xf32> to vector<128xf32>
    %177 = vector.shape_cast %176 : vector<128xf32> to vector<1x128xf32>
    %c0_79 = arith.constant 0 : index
    %c0_80 = arith.constant 0 : index
    %178 = vector.load %arg25[%c0_79, %c0_80] : memref<1x128xf32, #tpu.memory_space<vmem>>, vector<1x128xf32>
    tpu.vector_store %arg25[%c0_79, %c0_80], %177 {strides = array<i32>} : memref<1x128xf32, #tpu.memory_space<vmem>>, vector<1x128xf32>,
    return
  }
  func.func @transform_0(%arg0: i32) -> (i32, i32) {
    %c0_i32 = arith.constant 0 : i32
    %c0_i32_0 = arith.constant 0 : i32
    %c0_i32_1 = arith.constant 0 : i32
    return %c0_i32, %c0_i32_0 : i32, i32
  }
  func.func @transform_1(%arg0: i32) -> (i32, i32) {
    %c0_i32 = arith.constant 0 : i32
    %c0_i32_0 = arith.constant 0 : i32
    %c0_i32_1 = arith.constant 0 : i32
    return %c0_i32, %c0_i32_0 : i32, i32
  }
  func.func @transform_2(%arg0: i32) -> (i32, i32) {
    %c0_i32 = arith.constant 0 : i32
    %c0_i32_0 = arith.constant 0 : i32
    %c0_i32_1 = arith.constant 0 : i32
    return %c0_i32, %c0_i32_0 : i32, i32
  }
  func.func @transform_3(%arg0: i32) -> (i32, i32) {
    %c0_i32 = arith.constant 0 : i32
    %c0_i32_0 = arith.constant 0 : i32
    %c0_i32_1 = arith.constant 0 : i32
    return %c0_i32, %c0_i32_0 : i32, i32
  }
  func.func @transform_4(%arg0: i32) -> (i32, i32) {
    %c0_i32 = arith.constant 0 : i32
    %c0_i32_0 = arith.constant 0 : i32
    %c0_i32_1 = arith.constant 0 : i32
    return %c0_i32, %c0_i32_0 : i32, i32
  }
  func.func @transform_5(%arg0: i32) -> (i32, i32) {
    %c0_i32 = arith.constant 0 : i32
    %c0_i32_0 = arith.constant 0 : i32
    %c0_i32_1 = arith.constant 0 : i32
    return %c0_i32, %c0_i32_0 : i32, i32
  }
  func.func @transform_6(%arg0: i32) -> (i32, i32) {
    %c0_i32 = arith.constant 0 : i32
    %c0_i32_0 = arith.constant 0 : i32
    %c0_i32_1 = arith.constant 0 : i32
    return %c0_i32, %c0_i32_0 : i32, i32
  }
  func.func @transform_7(%arg0: i32) -> (i32, i32) {
    %c0_i32 = arith.constant 0 : i32
    %c0_i32_0 = arith.constant 0 : i32
    %c0_i32_1 = arith.constant 0 : i32
    return %c0_i32, %c0_i32_0 : i32, i32
  }
  func.func @transform_8(%arg0: i32) -> (i32, i32) {
    %c0_i32 = arith.constant 0 : i32
    %c0_i32_0 = arith.constant 0 : i32
    %c0_i32_1 = arith.constant 0 : i32
    return %c0_i32, %c0_i32_0 : i32, i32
  }
  func.func @transform_9(%arg0: i32) -> (i32, i32) {
    %c0_i32 = arith.constant 0 : i32
    %c0_i32_0 = arith.constant 0 : i32
    %c0_i32_1 = arith.constant 0 : i32
    return %c0_i32, %c0_i32_0 : i32, i32
  }
  func.func @transform_10(%arg0: i32) -> (i32, i32) {
    %c0_i32 = arith.constant 0 : i32
    %c0_i32_0 = arith.constant 0 : i32
    %c0_i32_1 = arith.constant 0 : i32
    return %c0_i32, %c0_i32_0 : i32, i32
  }
  func.func @transform_11(%arg0: i32) -> (i32, i32) {
    %c0_i32 = arith.constant 0 : i32
    %c0_i32_0 = arith.constant 0 : i32
    %c0_i32_1 = arith.constant 0 : i32
    return %c0_i32, %c0_i32_0 : i32, i32
  }
  func.func @transform_12(%arg0: i32) -> (i32, i32) {
    %c0_i32 = arith.constant 0 : i32
    %c0_i32_0 = arith.constant 0 : i32
    %c0_i32_1 = arith.constant 0 : i32
    return %c0_i32, %c0_i32_0 : i32, i32
  }
  func.func @transform_13(%arg0: i32) -> (i32, i32) {
    %c0_i32 = arith.constant 0 : i32
    %c0_i32_0 = arith.constant 0 : i32
    %c0_i32_1 = arith.constant 0 : i32
    return %c0_i32, %c0_i32_0 : i32, i32
  }
  func.func @transform_14(%arg0: i32) -> (i32, i32) {
    %c0_i32 = arith.constant 0 : i32
    %c0_i32_0 = arith.constant 0 : i32
    %c0_i32_1 = arith.constant 0 : i32
    return %c0_i32, %c0_i32_0 : i32, i32
  }
  func.func @transform_15(%arg0: i32) -> (i32, i32) {
    %c0_i32 = arith.constant 0 : i32
    %c0_i32_0 = arith.constant 0 : i32
    %c0_i32_1 = arith.constant 0 : i32
    return %c0_i32, %c0_i32_0 : i32, i32
  }
  func.func @transform_16(%arg0: i32) -> (i32, i32) {
    %c0_i32 = arith.constant 0 : i32
    %c0_i32_0 = arith.constant 0 : i32
    %c0_i32_1 = arith.constant 0 : i32
    return %c0_i32, %c0_i32_0 : i32, i32
  }
  func.func @transform_17(%arg0: i32) -> (i32, i32) {
    %c0_i32 = arith.constant 0 : i32
    %c0_i32_0 = arith.constant 0 : i32
    %c0_i32_1 = arith.constant 0 : i32
    return %c0_i32, %c0_i32_0 : i32, i32
  }
  func.func @transform_18(%arg0: i32) -> (i32, i32) {
    %c0_i32 = arith.constant 0 : i32
    %c0_i32_0 = arith.constant 0 : i32
    %c0_i32_1 = arith.constant 0 : i32
    return %c0_i32, %c0_i32_0 : i32, i32
  }
  func.func @transform_19(%arg0: i32) -> (i32, i32) {
    %c0_i32 = arith.constant 0 : i32
    %c0_i32_0 = arith.constant 0 : i32
    %c0_i32_1 = arith.constant 0 : i32
    return %c0_i32, %c0_i32_0 : i32, i32
  }
  func.func @transform_20(%arg0: i32) -> (i32, i32) {
    %c0_i32 = arith.constant 0 : i32
    %c0_i32_0 = arith.constant 0 : i32
    %c0_i32_1 = arith.constant 0 : i32
    return %c0_i32, %c0_i32_0 : i32, i32
  }
  func.func @transform_21(%arg0: i32) -> (i32, i32) {
    %c0_i32 = arith.constant 0 : i32
    %c0_i32_0 = arith.constant 0 : i32
    %c0_i32_1 = arith.constant 0 : i32
    return %c0_i32, %c0_i32_0 : i32, i32
  }
  func.func @transform_22(%arg0: i32) -> (i32, i32) {
    %c0_i32 = arith.constant 0 : i32
    %c0_i32_0 = arith.constant 0 : i32
    %c0_i32_1 = arith.constant 0 : i32
    return %c0_i32, %c0_i32_0 : i32, i32
  }
  func.func @transform_23(%arg0: i32) -> (i32, i32) {
    %c0_i32 = arith.constant 0 : i32
    %c0_i32_0 = arith.constant 0 : i32
    %c0_i32_1 = arith.constant 0 : i32
    return %c0_i32, %c0_i32_0 : i32, i32
  }
  func.func @transform_24(%arg0: i32) -> (i32, i32) {
    %c0_i32 = arith.constant 0 : i32
    %c0_i32_0 = arith.constant 0 : i32
    %c0_i32_1 = arith.constant 0 : i32
    return %c0_i32, %c0_i32_0 : i32, i32
  }
}

</mosaic_0001>

<bundles_post_ra>
// kernel: tpu_custom_call.1
= control target key start
LH: loop header
LB: loop body
LE: loop exit
PB: predicated region body
PF: predicated region fallthrough
CT: control target
= control target key end

     0   :  { %s1949_s0 = inlined_call_operand.vmem [shape: s32[16,1], index: 0, kind: input, shape index: {}]   ;;  %s1950_s1 = inlined_call_operand.vmem [shape: s32[16,1], index: 1, kind: input, shape index: {}]   ;;  %s1951_s2 = inlined_call_operand.hbm [shape: s32[1,16], index: 2, kind: input, shape index: {}]   ;;  %s1952_s3 = inlined_call_operand.vmem [shape: s32[8,1], index: 3, kind: input, shape index: {}]   ;;  %s1953_s4 = inlined_call_operand.hbm [shape: f32[8,32], index: 4, kind: input, shape index: {}]   ;;  %s1954_s5 = inlined_call_operand.vmem [shape: f32[16,32], index: 5, kind: input, shape index: {}]   ;;  %s1955_s6 = inlined_call_operand.vmem [shape: bf16[32,64], index: 6, kind: input, shape index: {}]   ;;  %s1956_s7 = inlined_call_operand.vmem [shape: bf16[32,128], index: 7, kind: input, shape index: {}]   ;;  %s1957_s8 = inlined_call_operand.vmem [shape: bf16[32,64], index: 8, kind: input, shape index: {}]   ;;  %s1958_s9 = inlined_call_operand.hbm [shape: f32[1,64], index: 9, kind: input, shape index: {}]   ;;  %s1959_s10 = inlined_call_operand.vmem [shape: bf16[64,64], index: 10, kind: input, shape index: {}]   ;;  %s1960_s11 = inlined_call_operand.hbm [shape: f32[1,64], index: 11, kind: input, shape index: {}]   ;;  %s1961_s12 = inlined_call_operand.vmem [shape: bf16[64,32], index: 12, kind: input, shape index: {}]   ;;  %s1962_s13 = inlined_call_operand.hbm [shape: f32[1,32], index: 13, kind: input, shape index: {}]   ;;  %s1963_s14 = inlined_call_operand.vmem [shape: bf16[32,64], index: 14, kind: input, shape index: {}]   ;;  %s1964_s15 = inlined_call_operand.hbm [shape: f32[1,64], index: 15, kind: input, shape index: {}]   ;;  %s1965_s16 = inlined_call_operand.vmem [shape: bf16[64,32], index: 16, kind: input, shape index: {}]   ;;  %s1966_s17 = inlined_call_operand.hbm [shape: f32[1,32], index: 17, kind: input, shape index: {}]   ;;  %s1967_s18 = inlined_call_operand.vmem [shape: bf16[32,128], index: 18, kind: input, shape index: {}]   ;;  %s1968_s19 = inlined_call_operand.hbm [shape: f32[1,128], index: 19, kind: input, shape index: {}]   ;;  %s1969_s20 = inlined_call_operand.vmem [shape: bf16[128,128], index: 20, kind: input, shape index: {}]   ;;  %s1970_s21 = inlined_call_operand.hbm [shape: f32[1,128], index: 21, kind: input, shape index: {}]   ;;  %s1971_s22 = inlined_call_operand.vmem [shape: bf16[128,16], index: 22, kind: input, shape index: {}]   ;;  %s1972_s23 = inlined_call_operand.hbm [shape: f32[2,16], index: 23, kind: input, shape index: {}]   ;;  %s1973_s24 = inlined_call_operand.hbm [shape: f32[1,128], index: 24, kind: output, shape index: {}]  }
   0x1   :  { %1980 = sst [smem:[#allocation27_spill]] %s1949_s0 }
   0x2   :  { %1981 = sst [smem:[#allocation28_spill]] %s1950_s1 }
   0x3   :  { %1982 = sst [smem:[#allocation29_spill]] %s1951_s2 }
   0x4   :  { %1983 = sst [smem:[#allocation30_spill]] %s1952_s3 }
   0x5   :  { %1984 = sst [smem:[#allocation31_spill]] %s1953_s4 }
   0x6   :  { %1985 = sst [smem:[#allocation32_spill]] %s1954_s5 }
   0x7   :  { %1986 = sst [smem:[#allocation33_spill]] %s1955_s6 }
   0x8   :  { %1987 = sst [smem:[#allocation34_spill]] %s1956_s7 }
   0x9   :  { %1988 = sst [smem:[#allocation35_spill]] %s1957_s8 }
   0xa   :  { %29 = vsyncpa [#allocation3], 0 }
   0xb   :  { %30 = vsyncpa [#allocation6], 0 }
   0xc   :  { %31 = vsyncpa [#allocation9], 0 }
   0xd   :  { %32 = vsyncpa [#allocation12], 0 }
   0xe   :  { %33 = vsyncpa [#allocation15], 0 }
   0xf   :  { %34 = vsyncpa [#allocation18], 0  ;;  %s1989_s27 = sld [smem:[#allocation31_spill]] }
  0x15   :  { %s58_s28 = sshll.u32 %s1989_s27, 4  ;;  %s59_s28 = int_to_ptr.hbm [resolvable:$true] %s58_s28 }
  0x16   :  { %35 = vsyncpa [#allocation4], 0  ;;  %s1564_s6 = smov [#allocation5]   ;;  %s90_s7 = sshll.u32 %s1960_s11, 4  ;;  %s91_s7 = int_to_ptr.hbm [resolvable:$true] %s90_s7 }
  0x17   :  { %s60_s2 = sshll.u32 %s1564_s6, 4  ;;  %s1565_s30 = smov [#allocation8]   ;;  %s61_s2 = int_to_ptr.vmem [resolvable:$true] %s60_s2 }
  0x18   :  { %63 = dma.hbm_to_vmem [thread:$0]  %s59_s28, 128, %s61_s2, [#allocation6]  }
  0x19   :  { %s92_s3 = sshll.u32 %s1565_s30, 4  ;;  %s116_s4 = sshll.u32 %s1964_s15, 4  ;;  %s93_s3 = int_to_ptr.vmem [resolvable:$true] %s92_s3  ;;  %s117_s4 = int_to_ptr.hbm [resolvable:$true] %s116_s4 }
  0x1a   :  { %95 = dma.hbm_to_vmem [thread:$0]  %s91_s7, 16, %s93_s3, [#allocation9]  }
  0x1b   :  { %s142_s26 = sshll.u32 %s1968_s19, 4  ;;  %s1566_s27 = smov [#allocation11]   ;;  %s143_s26 = int_to_ptr.hbm [resolvable:$true] %s142_s26 }
  0x1c   :  { %s118_s6 = sshll.u32 %s1566_s27, 4  ;;  %s1567_s11 = smov [#allocation14]   ;;  %s119_s6 = int_to_ptr.vmem [resolvable:$true] %s118_s6 }
  0x1d   :  { %121 = dma.hbm_to_vmem [thread:$0]  %s117_s4, 16, %s119_s6, [#allocation12]  }
  0x1e   :  { %s144_s28 = sshll.u32 %s1567_s11, 4  ;;  %s1990_s0 = sld [smem:[#allocation29_spill]]  ;;  %s145_s28 = int_to_ptr.vmem [resolvable:$true] %s144_s28 }
  0x1f   :  { %147 = dma.hbm_to_vmem [thread:$0]  %s143_s26, 16, %s145_s28, [#allocation15]  }
  0x20   :  { %s77_s3 = sshll.u32 %s1958_s9, 4  ;;  %s1568_s25 = smov [#allocation2]   ;;  %s78_s3 = int_to_ptr.hbm [resolvable:$true] %s77_s3 }
  0x21   :  { %s47_s19 = sshll.u32 %s1568_s25, 4  ;;  %s1569_s8 = smov [#allocation7]   ;;  %s48_s19 = int_to_ptr.vmem [resolvable:$true] %s47_s19 }
  0x22   :  { %s79_s4 = sshll.u32 %s1569_s8, 4  ;;  %s103_s27 = sshll.u32 %s1962_s13, 4  ;;  %s80_s4 = int_to_ptr.vmem [resolvable:$true] %s79_s4  ;;  %s104_s27 = int_to_ptr.hbm [resolvable:$true] %s103_s27 }
  0x23   :  { %82 = dma.hbm_to_vmem [thread:$0]  %s78_s3, 16, %s80_s4, [#allocation6]  }
  0x24   :  { %s45_s30 = sshll.u32 %s1990_s0, 4  ;;  %s129_s11 = sshll.u32 %s1966_s17, 4  ;;  %s46_s30 = int_to_ptr.hbm [resolvable:$true] %s45_s30  ;;  %s130_s11 = int_to_ptr.hbm [resolvable:$true] %s129_s11 }
  0x25   :  { %50 = dma.hbm_to_vmem [thread:$0]  %s46_s30, 16, %s48_s19, [#allocation3]  }
  0x26   :  { %s1570_s28 = smov [#allocation10]   ;;  %s1571_s2 = smov [#allocation13]  }
  0x27   :  { %s105_s9 = sshll.u32 %s1570_s28, 4  ;;  %s131_s29 = sshll.u32 %s1571_s2, 4  ;;  %s106_s9 = int_to_ptr.vmem [resolvable:$true] %s105_s9  ;;  %s132_s29 = int_to_ptr.vmem [resolvable:$true] %s131_s29 }
  0x28   :  { %108 = dma.hbm_to_vmem [thread:$0]  %s104_s27, 16, %s106_s9, [#allocation9]  }
  0x29   :  { %s155_s15 = sshll.u32 %s1970_s21, 4  ;;  %s168_s3 = sshll.u32 %s1972_s23, 4  ;;  %s156_s15 = int_to_ptr.hbm [resolvable:$true] %s155_s15  ;;  %s169_s3 = int_to_ptr.hbm [resolvable:$true] %s168_s3 }
  0x2a   :  { %134 = dma.hbm_to_vmem [thread:$0]  %s130_s11, 16, %s132_s29, [#allocation12]  }
  0x2b   :  { %s1572_s25 = smov [#allocation16]   ;;  %s1573_s19 = smov [#allocation17]  }
  0x2c   :  { %s157_s17 = sshll.u32 %s1572_s25, 4  ;;  %s170_s8 = sshll.u32 %s1573_s19, 4  ;;  %s158_s17 = int_to_ptr.vmem [resolvable:$true] %s157_s17  ;;  %s171_s8 = int_to_ptr.vmem [resolvable:$true] %s170_s8 }
  0x2d   :  { %160 = dma.hbm_to_vmem [thread:$0]  %s156_s15, 16, %s158_s17, [#allocation15]  }
  0x2e   :  { %173 = dma.hbm_to_vmem [thread:$0]  %s169_s3, 32, %s171_s8, [#allocation18]  }
  0x2f   :  { %1550 = dma.done.wait [#allocation3], 16  }
  0x30   :  { %1551 = vsyncadd [#allocation3], 4294967280 }
  0x31   :  { %1552 = dma.done.wait [#allocation6], 144  }
  0x32   :  { %1553 = vsyncadd [#allocation6], 4294967152 }
  0x33   :  { %1554 = dma.done.wait [#allocation9], 32  }
  0x34   :  { %1555 = vsyncadd [#allocation9], 4294967264 }
  0x35   :  { %1556 = dma.done.wait [#allocation12], 32  }
  0x36   :  { %1557 = vsyncadd [#allocation12], 4294967264 }
  0x37   :  { %1558 = dma.done.wait [#allocation15], 32  }
  0x38   :  { %1559 = vsyncadd [#allocation15], 4294967264 }
  0x39   :  { %1560 = dma.done.wait [#allocation18], 32  }
  0x3a   :  { %1561 = vsyncadd [#allocation18], 4294967264  ;;  %v1574_v0 = vmov 0   ;;  %s1991_s4 = sld [smem:[#allocation27_spill]]  ;;  %v1756_v6 = vld [vmem:[#allocation5] sm:$0xff]  ;;  %vm235_vm0 = vcmask 261120   ;;  %v281_v17 = vlaneseq }
  0x3b   :  { %1240 = vset.pattern.permute.xlu0 %v1574_v0  ;;  %1241 = vset.pattern.permute.xlu1 %v1574_v0  ;;  %s1992_s27 = sld [smem:[#allocation33_spill]]  ;;  %v218_v9 = vpack.c.bf16 %v1756_v6, %v1756_v6  ;;  %v1242_v11 = vld [vmem:[#allocation11] ss:$0 sm:$0xff]  ;;  %s1575_s17 = smov 64   ;;  %vm319_vm6 = vcmask 1043456   ;;  %v1576_v22 = vmov 0.0  }
  0x3c   :  { %s1993_s11 = sld [smem:[#allocation34_spill]]  ;;  %v1781_v18 = vand.u32 127, %v281_v17  ;;  %vm315_vm7 = vcmask 64512   ;;  %v1191_v42 = vld [vmem:[%s1959_s10 + $0x18] sm:$0xff]  ;;  %v1190_v44 = vld [vmem:[%s1959_s10 + $0x10] sm:$0xff]  ;;  %v1189_v46 = vld [vmem:[%s1959_s10 + $0x8] sm:$0xff] }
  0x3d   :  { %s1994_s15 = sld [smem:[#allocation28_spill]]  ;;  %v1244_v48 = vld [vmem:[#allocation7] ss:$0 sm:$0xff]  ;;  %v1188_v51 = vld [vmem:[%s1959_s10] sm:$0xff]  ;;  %vm448_vm8 = vcmask 523264   ;;  %vm664_vm11 = vcmask 130048  }
  0x3e   :  { %s1995_s21 = sld [smem:[#allocation30_spill]]  ;;  %s1578_s25 = smov 32  }
  0x3f   :  { %s1996_s1 = sld [smem:[#allocation35_spill]]  ;;  %s1579_s19 = smov 16  }
  0x40   :  { %v283_v1 = vld [vmem:[%s1991_s4] sm:$0xff]  ;;  %v284_v8 = vld [vmem:[%s1991_s4 + $0x8] sm:$0xff]  ;;  %s1580_s8 = smov 48   ;;  %s1582_s23 = smov 80  }
  0x41   :  { %v1183_v2 = vld [vmem:[%s1992_s27 + $0x8] sm:$0xff]  ;;  %286 = vperm.xlu0 %1240, %v283_v1   ;;  %v1182_v4 = vld [vmem:[%s1992_s27] sm:$0xff]  ;;  %s998_s5 = sshll.u32 %s1973_s24, 4  ;;  %s999_s5 = int_to_ptr.hbm [resolvable:$true] %s998_s5 }
  0x42   :  { %v1185_v3 = vld [vmem:[%s1993_s11 + $0x8] sm:$0xff]  ;;  %v1184_v5 = vld [vmem:[%s1993_s11] sm:$0xff]  ;;  %245 = vmatpush.bf16.msra.mxu0 %v1183_v2  ;;  %s1997_s11 = sld [smem:[#allocation32_spill]] }
  0x43   :  { %274 = vmatpush.bf16.msra.mxu1 %v1185_v3  ;;  %v298_v7 = vld [vmem:[%s1994_s15] sm:$0xff]  ;;  %v299_v10 = vld [vmem:[%s1994_s15 + $0x8] sm:$0xff] }
  0x44   :  { %301 = vperm.xlu1 %1241, %v298_v7   ;;  %v1775_v12 = vld [vmem:[%s1995_s21] sm:$0xff]  ;;  %s1581_s21 = smov 96  }
  0x45   :  { %v833_v13 = vmul.u32 64, %v1775_v12  ;;  %vm849_vm1 = vcmp.eq.s32.totalorder %v1775_v12, 0  ;;  %v1187_v27 = vld [vmem:[%s1996_s1 + $0x8] sm:$0xff]  ;;  %v1186_v35 = vld [vmem:[%s1996_s1] sm:$0xff]  ;;  %vm858_vm9 = vcmp.eq.s32.totalorder %v1775_v12, 1 }
  0x46   :  { %246 = vmatpush.bf16.msra.mxu0 %v1182_v4  ;;  %v851_v14 = vsel %vm849_vm1, 1, %v1574_v0 }
  0x47   :  { %275 = vmatpush.bf16.msra.mxu1 %v1184_v5 }
  0x48   :  { %v1800_v38 = vld [vmem:[%s1997_s11] sm:$0xff]  ;;  %v1805_v39 = vld [vmem:[%s1997_s11 + $0x8] sm:$0xff] }
  0x49   :  { %289 = vperm.xlu0 %1240, %v284_v8   ;;  %1021 = vmatmul.msk.bf16.vlgmr.msra.gmra.mxu0 %vm235_vm0, %v218_v9  ;;  %v337_v40 = vpack.c.bf16 %v1805_v39, %v1800_v38 }
  0x4a   :  { %1030 = vmatmul.msk.bf16.vlgmr.msra.gmra.mxu1 %vm235_vm0, %v218_v9  ;;  %v1195_v9 = vld [vmem:[%s1961_s12 + $0x18] sm:$0xff] }
  0x4b   :  { %522 = vmatpush.bf16.msrb.mxu0 %v1195_v9  ;;  %v838_v9 = vadd.s32 1, %v1775_v12  ;;  %v1247_v12 = vld [vmem:[#allocation13] ss:$0 sm:$0xff] }
  0x4c   :  { %304 = vperm.xlu1 %1241, %v299_v10   ;;  %v1194_v10 = vld [vmem:[%s1961_s12 + $0x10] sm:$0xff] }
  0x4f   :  { %523 = vmatpush.bf16.msrb.mxu0 %v1194_v10  ;;  %v839_v10 = vmul.u32 64, %v838_v9 }
  0x51   :  { %581 = vrot.lane.b32.xlu0 %v1242_v11, %s1575_s17  ;;  %v1193_v11 = vld [vmem:[%s1961_s12 + $0x8] sm:$0xff] }
  0x53   :  { %524 = vmatpush.bf16.msrb.mxu0 %v1193_v11  ;;  %v860_v11 = vsel %vm858_vm9, 1, %v1574_v0 }
  0x59   :  { %835 = vperm.xlu0 %1240, %v833_v13   ;;  %v1245_v13 = vld [vmem:[#allocation8] ss:$0 sm:$0xff] }
  0x61   :  { %853 = vperm.xlu0 %1240, %v851_v14   ;;  %v1192_v14 = vld [vmem:[%s1961_s12] sm:$0xff] }
  0x62   :  { %525 = vmatpush.bf16.msrb.mxu0 %v1192_v14  ;;  %v1873_v14 = vshrl.u32 %v281_v17, 7 }
  0xb3   :  { %v287_v16 = vpop.permute.xlu0 %286 }
  0xb4   :  { %vm291_vm4 = vcmp.eq.s32.totalorder %v287_v16, %v1781_v18 }
  0xb5   :  { %v1031_v28 = vsel %vm291_vm4, 1.0, %v1576_v22 }
  0xb6   :  { %v302_v15 = vpop.permute.xlu1 %301 }
  0xb7   :  { %vm306_vm2 = vcmp.eq.s32.totalorder %v302_v15, %v1781_v18 }
  0xb8   :  { %v1033_v23 = vsel %vm306_vm2, 1.0, %v1576_v22 }
  0xbb   :  { %v290_v20 = vpop.permute.xlu0 %289 }
  0xbc   :  { %vm292_vm5 = vcmp.eq.s32.totalorder %v290_v20, %v1781_v18 }
  0xbd   :  { %v1032_v29 = vsel %vm292_vm5, 1.0, %v1576_v22 }
  0xbe   :  { %v305_v19 = vpop.permute.xlu1 %304  ;;  %v297_v34 = vpack.c.bf16 %v1032_v29, %v1031_v28 }
  0xbf   :  { %vm307_vm3 = vcmp.eq.s32.totalorder %v305_v19, %v1781_v18 }
  0xc0   :  { %v1034_v26 = vsel %vm307_vm3, 1.0, %v1576_v22 }
  0xc1   :  { %v312_v32 = vpack.c.bf16 %v1034_v26, %v1033_v23 }
  0xc6   :  { %v248_v21 = vpop.f32.mrf.mxu0 }
  0xc7   :  { %v313_v24 = vpack.c.bf16 %v248_v21, %v248_v21  ;;  %v277_v25 = vpop.f32.mrf.mxu1 }
  0xc8   :  { %v314_v30 = vpack.c.bf16 %v277_v25, %v277_v25 }
  0xc9   :  { %v342_v31 = vsel %vm319_vm6, %v313_v24, 0 }
  0xca   :  { %v321_v33 = vsel %vm319_vm6, %v314_v30, 0  ;;  %351 = vmatpush.bf16.msra.mxu3 %v342_v31  ;;  %vm968_vm6 = vcmask 392192  }
  0xcb   :  { %330 = vmatpush.bf16.msra.mxu2 %v321_v33 }
  0xcd   :  { %1036 = vmatmul.msk.bf16.vlgmr.msra.gmra.mxu3 %vm315_vm7, %v297_v34 }
  0xce   :  { %383 = vmatpush.bf16.msrb.mxu3 %v1187_v27  ;;  %1035 = vmatmul.msk.bf16.vlgmr.msra.gmra.mxu2 %vm315_vm7, %v312_v32  ;;  %v250_v36 = vpop.f32.mrf.mxu0  ;;  %vm971_vm7 = vcmask 654336  }
  0xcf   :  { %v279_v37 = vpop.f32.mrf.mxu1  ;;  %v1196_v36 = vld [vmem:[%s1963_s14] sm:$0xff] }
  0xd2   :  { %384 = vmatpush.bf16.msrb.mxu3 %v1186_v35  ;;  %v1197_v35 = vld [vmem:[%s1963_s14 + $0x8] sm:$0xff] }
  0xd3   :  { %560 = vmatpush.bf16.msrb.mxu1 %v1197_v35 }
  0xd6   :  { %456 = vmatpush.bf16.msra.mxu3 %v1191_v42 }
  0xd7   :  { %561 = vmatpush.bf16.msrb.mxu1 %v1196_v36 }
  0xda   :  { %457 = vmatpush.bf16.msra.mxu3 %v1190_v44 }
  0xdd   :  { %1045 = vmatmul.msk.bf16.vlgmr.msrb.gmra.mxu3 %vm235_vm0, %v337_v40  ;;  %v1246_v40 = vld [vmem:[#allocation10] ss:$0 sm:$0xff] }
  0xde   :  { %458 = vmatpush.bf16.msra.mxu3 %v1189_v46 }
  0xe2   :  { %459 = vmatpush.bf16.msra.mxu3 %v1188_v51 }
 0x150   :  { %v353_v41 = vpop.f32.mrf.mxu3 }
 0x151   :  { %v1816_v45 = vpop.f32.mrf.mxu2 }
 0x152   :  { %v354_v47 = vadd.f32 %v353_v41, %v1816_v45 }
 0x158   :  { %v355_v43 = vpop.f32.mrf.mxu3 }
 0x159   :  { %v1825_v53 = vpop.f32.mrf.mxu2 }
 0x15a   :  { %v356_v55 = vadd.f32 %v355_v43, %v1825_v53 }
 0x160   :  { %v386_v49 = vpop.f32.mrf.mxu3 }
 0x161   :  { %v391_v50 = vadd.f32 %v386_v49, %v354_v47 }
 0x163   :  { %v397_v52 = vadd.f32 %v1244_v48, %v391_v50 }
 0x165   :  { %v399_v54 = vsub.f32 0.0, %v397_v52 }
 0x167   :  { %v401_v56 = vmul.f32 1.442695, %v399_v54 }
 0x168   :  { %v388_v57 = vpop.f32.mrf.mxu3 }
 0x169   :  { %v392_v58 = vadd.f32 %v388_v57, %v356_v55  ;;  %1252 = vpow2.f32 %v401_v56 }
 0x16b   :  { %v398_v59 = vadd.f32 %v1244_v48, %v392_v58 }
 0x16d   :  { %v400_v60 = vsub.f32 0.0, %v398_v59 }
 0x16f   :  { %v403_v61 = vmul.f32 1.442695, %v400_v60  ;;  %v1253_v62 = vpop.eup %1252 }
 0x170   :  { %v405_v63 = vadd.f32 1.0, %v1253_v62  ;;  %v1201_v62 = vld [vmem:[%s1965_s16 + $0x18] sm:$0xff] }
 0x171   :  { %1254 = vpow2.f32 %v403_v61  ;;  %645 = vmatpush.bf16.msrb.mxu2 %v1201_v62 }
 0x172   :  { %1256 = vrcp.f32 %v405_v63 }
 0x177   :  { %v1255_v1 = vpop.eup %1254 }
 0x178   :  { %v406_v2 = vadd.f32 1.0, %v1255_v1  ;;  %v1257_v3 = vpop.eup %1256 }
 0x179   :  { %v409_v5 = vmul.f32 %v1257_v3, %v397_v52  ;;  %v582_v52 = vpop.permute.xlu0 %581  ;;  %v1198_v3 = vld [vmem:[%s1965_s16] sm:$0xff] }
 0x17a   :  { %1258 = vrcp.f32 %v406_v2 }
 0x180   :  { %v1259_v4 = vpop.eup %1258 }
 0x181   :  { %v410_v7 = vmul.f32 %v1259_v4, %v398_v59 }
 0x183   :  { %v411_v8 = vpack.c.bf16 %v410_v7, %v409_v5 }
 0x185   :  { %1062 = vmatmul.msk.bf16.vlgmr.msra.gmra.mxu3 %vm448_vm8, %v411_v8 }
 0x208   :  { %v461_v15 = vpop.f32.mrf.mxu3 }
 0x209   :  { %v462_v16 = vadd.f32 %v1245_v13, %v461_v15  ;;  %v1248_v15 = vld [vmem:[#allocation2] ss:$0 sm:$0xff] }
 0x20a   :  { %vm659_vm10 = vcmp.eq.s32.totalorder %v1248_v15, %v1873_v14 }
 0x20b   :  { %v466_v19 = vsub.f32 0.0, %v462_v16 }
 0x20d   :  { %v468_v20 = vmul.f32 1.442695, %v466_v19 }
 0x20f   :  { %1260 = vpow2.f32 %v468_v20 }
 0x210   :  { %v463_v21 = vpop.f32.mrf.mxu3 }
 0x211   :  { %v464_v23 = vadd.f32 %v1245_v13, %v463_v21 }
 0x213   :  { %v467_v24 = vsub.f32 0.0, %v464_v23 }
 0x215   :  { %v470_v25 = vmul.f32 1.442695, %v467_v24  ;;  %v1261_v26 = vpop.eup %1260 }
 0x216   :  { %v472_v27 = vadd.f32 1.0, %v1261_v26  ;;  %v1203_v26 = vld [vmem:[%s1967_s18 + $0x8] sm:$0xff] }
 0x217   :  { %1262 = vpow2.f32 %v470_v25  ;;  %732 = vmatpush.bf16.msra.mxu0 %v1203_v26 }
 0x218   :  { %1264 = vrcp.f32 %v472_v27 }
 0x21d   :  { %v1263_v28 = vpop.eup %1262 }
 0x21e   :  { %v473_v29 = vadd.f32 1.0, %v1263_v28  ;;  %v1265_v30 = vpop.eup %1264  ;;  %v1202_v28 = vld [vmem:[%s1967_s18] sm:$0xff] }
 0x21f   :  { %v476_v32 = vmul.f32 %v1265_v30, %v462_v16  ;;  %v1106_v16 = vsel %vm659_vm10, 1.0, %v1576_v22  ;;  %733 = vmatpush.bf16.msra.mxu0 %v1202_v28  ;;  %v1251_v28 = vld [vmem:[#allocation17 + $0x1] ss:$0 sm:$0xff] }
 0x220   :  { %1266 = vrcp.f32 %v473_v29  ;;  %v681_v19 = vsel %vm664_vm11, %v1106_v16, 0.0  ;;  %v662_v25 = vpack.c.bf16 %v1106_v16, %v1106_v16  ;;  %v1211_v29 = vld [vmem:[%s1969_s20 + $0x38] sm:$0xff] }
 0x221   :  { %814 = vmatpush.bf16.msra.mxu1 %v1211_v29 }
 0x226   :  { %v1267_v31 = vpop.eup %1266 }
 0x227   :  { %v477_v33 = vmul.f32 %v1267_v31, %v464_v23 }
 0x229   :  { %v478_v34 = vpack.c.bf16 %v477_v33, %v476_v32 }
 0x22b   :  { %1079 = vmatmul.msk.bf16.vlgmr.msrb.gmra.mxu0 %vm448_vm8, %v478_v34 }
 0x2a8   :  { %v527_v37 = vpop.f32.mrf.mxu0 }
 0x2a9   :  { %v528_v41 = vadd.f32 %v1246_v40, %v527_v37 }
 0x2ab   :  { %v532_v44 = vadd.f32 %v528_v41, %v1800_v38 }
 0x2b0   :  { %v529_v42 = vpop.f32.mrf.mxu0 }
 0x2b1   :  { %v530_v43 = vadd.f32 %v1246_v40, %v529_v42 }
 0x2b3   :  { %v533_v46 = vadd.f32 %v530_v43, %v1805_v39 }
 0x2b5   :  { %v534_v47 = vpack.c.bf16 %v533_v46, %v532_v44 }
 0x2b7   :  { %1088 = vmatmul.msk.bf16.vlgmr.msrb.gmra.mxu1 %vm235_vm0, %v534_v47 }
 0x334   :  { %v563_v48 = vpop.f32.mrf.mxu1 }
 0x335   :  { %570 = vrot.lane.b32.xlu2 %v563_v48, %s1575_s17  ;;  %v1210_v48 = vld [vmem:[%s1969_s20 + $0x30] sm:$0xff] }
 0x336   :  { %815 = vmatpush.bf16.msra.mxu1 %v1210_v48 }
 0x33c   :  { %v565_v49 = vpop.f32.mrf.mxu1 }
 0x33d   :  { %572 = vrot.lane.b32.xlu2 %v565_v49, %s1575_s17  ;;  %v1209_v49 = vld [vmem:[%s1969_s20 + $0x28] sm:$0xff] }
 0x33e   :  { %816 = vmatpush.bf16.msra.mxu1 %v1209_v49 }
 0x366   :  { %682 = vadd.xlane.f32.xlu2 %v681_v19 }
 0x38f   :  { %v571_v50 = vpop.permute.xlu2 %570 }
 0x390   :  { %v576_v51 = vadd.f32 %v571_v50, %v1816_v45  ;;  %v1200_v45 = vld [vmem:[%s1965_s16 + $0x10] sm:$0xff]  ;;  %v1208_v50 = vld [vmem:[%s1969_s20 + $0x20] sm:$0xff] }
 0x391   :  { %646 = vmatpush.bf16.msrb.mxu2 %v1200_v45  ;;  %817 = vmatpush.bf16.msra.mxu1 %v1208_v50 }
 0x392   :  { %v584_v54 = vadd.f32 %v582_v52, %v576_v51  ;;  %v1206_v51 = vld [vmem:[%s1969_s20 + $0x10] sm:$0xff] }
 0x394   :  { %v586_v55 = vsub.f32 0.0, %v584_v54 }
 0x396   :  { %v588_v56 = vmul.f32 1.442695, %v586_v55  ;;  %v1219_v55 = vld [vmem:[%s1971_s22 + $0x38] sm:$0xff] }
 0x397   :  { %v573_v57 = vpop.permute.xlu2 %572 }
 0x398   :  { %v577_v38 = vadd.f32 %v573_v57, %v1825_v53  ;;  %1268 = vpow2.f32 %v588_v56  ;;  %v1199_v53 = vld [vmem:[%s1965_s16 + $0x8] sm:$0xff]  ;;  %v1249_v56 = vld [vmem:[#allocation14] ss:$0 sm:$0xff] }
 0x399   :  { %647 = vmatpush.bf16.msrb.mxu2 %v1199_v53  ;;  %v1217_v53 = vld [vmem:[%s1971_s22 + $0x28] sm:$0xff] }
 0x39a   :  { %v585_v39 = vadd.f32 %v582_v52, %v577_v38  ;;  %v1205_v52 = vld [vmem:[%s1969_s20 + $0x8] sm:$0xff] }
 0x39c   :  { %v587_v58 = vsub.f32 0.0, %v585_v39 }
 0x39d   :  { %648 = vmatpush.bf16.msrb.mxu2 %v1198_v3  ;;  %v1215_v3 = vld [vmem:[%s1971_s22 + $0x18] sm:$0xff] }
 0x39e   :  { %v590_v59 = vmul.f32 1.442695, %v587_v58  ;;  %v1269_v60 = vpop.eup %1268 }
 0x39f   :  { %v592_v61 = vadd.f32 1.0, %v1269_v60 }
 0x3a0   :  { %1270 = vpow2.f32 %v590_v59 }
 0x3a1   :  { %1272 = vrcp.f32 %v592_v61  ;;  %931 = vmatpush.bf16.msra.mxu2 %v1219_v55 }
 0x3a6   :  { %v1271_v63 = vpop.eup %1270 }
 0x3a7   :  { %v593_v1 = vadd.f32 1.0, %v1271_v63  ;;  %v1273_v2 = vpop.eup %1272 }
 0x3a8   :  { %v596_v5 = vmul.f32 %v1273_v2, %v584_v54  ;;  %v1204_v54 = vld [vmem:[%s1969_s20] sm:$0xff] }
 0x3a9   :  { %1274 = vrcp.f32 %v593_v1  ;;  %v1218_v1 = vld [vmem:[%s1971_s22 + $0x30] sm:$0xff]  ;;  %v1216_v2 = vld [vmem:[%s1971_s22 + $0x20] sm:$0xff] }
 0x3aa   :  { %932 = vmatpush.bf16.msra.mxu2 %v1218_v1 }
 0x3ae   :  { %933 = vmatpush.bf16.msra.mxu2 %v1217_v53 }
 0x3af   :  { %v1275_v4 = vpop.eup %1274 }
 0x3b0   :  { %v597_v7 = vmul.f32 %v1275_v4, %v585_v39  ;;  %v1214_v4 = vld [vmem:[%s1971_s22 + $0x10] sm:$0xff] }
 0x3b2   :  { %v598_v8 = vpack.c.bf16 %v597_v7, %v596_v5  ;;  %934 = vmatpush.bf16.msra.mxu2 %v1216_v2  ;;  %v1213_v5 = vld [vmem:[%s1971_s22 + $0x8] sm:$0xff]  ;;  %v1212_v7 = vld [vmem:[%s1971_s22] sm:$0xff]  ;;  %s1577_s22 = smov 112  }
 0x3b4   :  { %612 = vrot.lane.b32.xlu1 %v598_v8, %s1575_s17  ;;  %v1250_v8 = vld [vmem:[#allocation16] ss:$0 sm:$0xff] }
 0x3b6   :  { %935 = vmatpush.bf16.msra.mxu2 %v1215_v3 }
 0x3ba   :  { %936 = vmatpush.bf16.msra.mxu2 %v1214_v4 }
 0x3bc   :  { %841 = vperm.xlu1 %1241, %v839_v10  }
 0x3be   :  { %937 = vmatpush.bf16.msra.mxu2 %v1213_v5 }
 0x3c2   :  { %938 = vmatpush.bf16.msra.mxu2 %v1212_v7 }
 0x3c4   :  { %862 = vperm.xlu1 %1241, %v860_v11  }
 0x3d9   :  { %v683_v17 = vpop.xlane.xlu2 %682 }
 0x3da   :  { %v684_v27 = vmax.f32 %v683_v17, 1.0 }
 0x3dc   :  { %1276 = vrcp.f32 %v684_v27  ;;  %vm690_vm12 = vweird.f32 %v684_v27  ;;  %v696_v34 = vand.u32 2147483648, %v684_v27  ;;  %v694_v36 = vand.u32 2147483647, %v684_v27 }
 0x3de   :  { %v697_v37 = vor.u32 1.1754944e-38, %v696_v34  ;;  %vm695_vm15 = vcmp.eq.f32.partialorder %v694_v36, 8.507059e+37 }
 0x3e2   :  { %v1277_v30 = vpop.eup %1276 }
 0x3e3   :  { %v686_v31 = vmul.f32 %v1277_v30, %v684_v27  ;;  %vm691_vm13 = vweird.f32 %v1277_v30  ;;  %v1243_v27 = vld [vmem:[#allocation17] ss:$0 sm:$0xff] }
 0x3e4   :  { %vm692_vm14 = vmor %vm690_vm12, %vm691_vm13  ;;  %vm973_vm12 = vcmask 785408   ;;  %vm975_vm13 = vcmask 916480  }
 0x3e5   :  { %v687_v32 = vsub.f32 1.0, %v686_v31 }
 0x3e7   :  { %v688_v33 = vmul.f32 %v1277_v30, %v687_v32 }
 0x3e9   :  { %v689_v35 = vadd.f32 %v1277_v30, %v688_v33 }
 0x3eb   :  { %v693_v40 = vsel %vm692_vm14, %v1277_v30, %v689_v35  ;;  %v979_v35 = vadd.s32 1, %v1873_v14 }
 0x3ec   :  { %v698_v42 = vsel %vm695_vm15, %v697_v37, %v693_v40 }
 0x426   :  { %v613_v13 = vpop.permute.xlu1 %612 }
 0x427   :  { %1105 = vmatmul.msk.bf16.vlgmr.msrb.gmra.mxu2 %vm448_vm8, %v613_v13 }
 0x4aa   :  { %v650_v20 = vpop.f32.mrf.mxu2 }
 0x4ab   :  { %v651_v0 = vadd.f32 %v1247_v12, %v650_v20  ;;  %v842_v20 = vpop.permute.xlu1 %841 }
 0x4ac   :  { %vm843_vm1 = vcmp.lt.s32.totalorder %v1781_v18, %v842_v20 }
 0x4b2   :  { %v652_v21 = vpop.f32.mrf.mxu2 }
 0x4b3   :  { %v653_v23 = vadd.f32 %v1247_v12, %v652_v21  ;;  %v836_v12 = vpop.permute.xlu0 %835  ;;  %v863_v26 = vpop.permute.xlu1 %862 }
 0x4b4   :  { %vm837_vm2 = vcmp.ge.s32.totalorder %v1781_v18, %v836_v12  ;;  %vm864_vm5 = vcmp.eq.s32.totalorder %v863_v26, 1 }
 0x4b5   :  { %v663_v24 = vpack.c.bf16 %v653_v23, %v651_v0  ;;  %vm844_vm3 = vmand %vm837_vm2, %vm843_vm1 }
 0x4b6   :  { %v1149_v23 = vsel %vm844_vm3, 1.0, %v1576_v22 }
 0x4b7   :  { %675 = vmatpush.bf16.msrb.mxu3 %v663_v24 }
 0x4ba   :  { %1107 = vmatmul.msk.bf16.vlgmr.msrb.gmra.mxu3 %vm664_vm11, %v662_v25 }
 0x4bb   :  { %v854_v17 = vpop.permute.xlu0 %853 }
 0x4bc   :  { %vm855_vm4 = vcmp.eq.s32.totalorder %v854_v17, 1 }
 0x4bd   :  { %v857_v29 = vsel %vm855_vm4, %v1243_v27, 0.0 }
 0x4be   :  { %v866_v30 = vsel %vm864_vm5, %v1251_v28, %v857_v29 }
 0x53d   :  { %v677_v41 = vpop.f32.mrf.mxu3 }
 0x53e   :  { %v699_v43 = vmul.f32 %v698_v42, %v677_v41  ;;  %v977_v41 = vmul.u32 16, %v1873_v14  ;;  %v980_v42 = vmul.u32 16, %v979_v35 }
 0x540   :  { %v700_v44 = vadd.f32 %v699_v43, %v1756_v6  ;;  %v1207_v6 = vld [vmem:[%s1969_s20 + $0x18] sm:$0xff]  ;;  %vm978_vm9 = vcmp.ge.s32.totalorder %v1781_v18, %v977_v41  ;;  %vm981_vm10 = vcmp.lt.s32.totalorder %v1781_v18, %v980_v42 }
 0x541   :  { %818 = vmatpush.bf16.msra.mxu1 %v1207_v6  ;;  %vm982_vm14 = vmand %vm978_vm9, %vm981_vm10 }
 0x542   :  { %v702_v46 = vpack.c.bf16 %v700_v44, %v700_v44 }
 0x544   :  { %1116 = vmatmul.msk.bf16.vlgmr.msra.gmra.mxu0 %vm235_vm0, %v702_v46 }
 0x545   :  { %v679_v47 = vpop.f32.mrf.mxu3  ;;  %819 = vmatpush.bf16.msra.mxu1 %v1206_v51 }
 0x549   :  { %820 = vmatpush.bf16.msra.mxu1 %v1205_v52 }
 0x54d   :  { %821 = vmatpush.bf16.msra.mxu1 %v1204_v54 }
 0x5c1   :  { %v735_v57 = vpop.f32.mrf.mxu0 }
 0x5c2   :  { %v736_v38 = vadd.f32 %v1249_v56, %v735_v57 }
 0x5c4   :  { %v739_v39 = vsub.f32 0.0, %v736_v38 }
 0x5c6   :  { %v740_v58 = vmul.f32 1.442695, %v739_v39 }
 0x5c8   :  { %1278 = vpow2.f32 %v740_v58 }
 0x5c9   :  { %v737_v59 = vpop.f32.mrf.mxu0 }
 0x5ce   :  { %v1279_v60 = vpop.eup %1278 }
 0x5cf   :  { %v742_v61 = vadd.f32 1.0, %v1279_v60 }
 0x5d1   :  { %1280 = vrcp.f32 %v742_v61 }
 0x5d7   :  { %v1281_v62 = vpop.eup %1280 }
 0x5d8   :  { %v744_v63 = vmul.f32 %v1281_v62, %v736_v38 }
 0x5da   :  { %v745_v45 = vpack.c.bf16 %v744_v63, %v744_v63 }
 0x5dc   :  { %822 = vmatmul.bf16.vlgmr.msra.gmra.mxu1 %v745_v45 }
 0x659   :  { %v823_v9 = vpop.f32.mrf.mxu1 }
 0x65a   :  { %v824_v10 = vadd.f32 %v1250_v8, %v823_v9 }
 0x65c   :  { %v827_v11 = vsub.f32 0.0, %v824_v10 }
 0x65e   :  { %v828_v13 = vmul.f32 1.442695, %v827_v11 }
 0x660   :  { %1282 = vpow2.f32 %v828_v13 }
 0x661   :  { %v825_v15 = vpop.f32.mrf.mxu1 }
 0x666   :  { %v1283_v16 = vpop.eup %1282 }
 0x667   :  { %v830_v19 = vadd.f32 1.0, %v1283_v16 }
 0x669   :  { %1284 = vrcp.f32 %v830_v19 }
 0x66f   :  { %v1285_v21 = vpop.eup %1284 }
 0x670   :  { %v832_v0 = vmul.f32 %v1285_v21, %v824_v10 }
 0x672   :  { %v847_v24 = vmul.f32 %v1149_v23, %v832_v0 }
 0x674   :  { %v848_v25 = vpack.c.bf16 %v847_v24, %v847_v24 }
 0x676   :  { %939 = vmatmul.bf16.vlgmr.msra.gmra.mxu2 %v848_v25 }
 0x6f9   :  { %v940_v31 = vpop.f32.mrf.mxu2 }
 0x6fa   :  { %v941_v32 = vadd.f32 %v940_v31, %v866_v30 }
 0x6fc   :  { %963 = vrot.lane.b32.xlu2 %v941_v32, %s1577_s22  ;;  %948 = vrot.lane.b32.xlu1 %v941_v32, %s1578_s25 }
 0x6fd   :  { %945 = vrot.lane.b32.xlu0 %v941_v32, %s1579_s19 }
 0x701   :  { %v942_v22 = vpop.f32.mrf.mxu2 }
 0x704   :  { %954 = vrot.lane.b32.xlu1 %v941_v32, %s1575_s17  ;;  %s1583_s17 = smov [#allocation19]  }
 0x705   :  { %951 = vrot.lane.b32.xlu0 %v941_v32, %s1580_s8  ;;  %s996_s4 = sshll.u32 %s1583_s17, 4  ;;  %s997_s4 = int_to_ptr.vmem [resolvable:$true] %s996_s4 }
 0x70c   :  { %960 = vrot.lane.b32.xlu1 %v941_v32, %s1581_s21 }
 0x70d   :  { %957 = vrot.lane.b32.xlu0 %v941_v32, %s1582_s23 }
 0x756   :  { %v964_v50 = vpop.permute.xlu2 %963 }
 0x76e   :  { %v949_v33 = vpop.permute.xlu1 %948 }
 0x76f   :  { %v946_v34 = vpop.permute.xlu0 %945 }
 0x770   :  { %v966_v40 = vsel %vm664_vm11, %v941_v32, %v946_v34 }
 0x771   :  { %v967_v43 = vsel %vm235_vm0, %v966_v40, %v949_v33 }
 0x776   :  { %v955_v36 = vpop.permute.xlu1 %954 }
 0x777   :  { %v952_v37 = vpop.permute.xlu0 %951 }
 0x778   :  { %v969_v44 = vsel %vm968_vm6, %v967_v43, %v952_v37 }
 0x779   :  { %v970_v47 = vsel %vm448_vm8, %v969_v44, %v955_v36 }
 0x77e   :  { %v961_v46 = vpop.permute.xlu1 %960 }
 0x77f   :  { %v958_v48 = vpop.permute.xlu0 %957 }
 0x780   :  { %v972_v49 = vsel %vm971_vm7, %v970_v47, %v958_v48 }
 0x781   :  { %v974_v6 = vsel %vm973_vm12, %v972_v49, %v961_v46 }
 0x782   :  { %v976_v14 = vsel %vm975_vm13, %v974_v6, %v964_v50 }
 0x783   :  { %v983_v51 = vsel %vm982_vm14, %v976_v14, 0.0 }
 0x784   :  { %v984_v52 = vrot.slane %v983_v51, 4 }
 0x786   :  { %v985_v54 = vadd.f32 %v984_v52, %v983_v51 }
 0x788   :  { %v986_v55 = vrot.slane %v985_v54, 2 }
 0x78a   :  { %v987_v56 = vadd.f32 %v986_v55, %v985_v54 }
 0x78c   :  { %v988_v18 = vrot.slane %v987_v56, 1 }
 0x78e   :  { %v989_v57 = vadd.f32 %v988_v18, %v987_v56 }
 0x790   :  { %990 = vst [vmem:[#allocation19] sm:$0x1] %v989_v57 }
 0x791   :  { %1001 = dma.vmem_to_hbm [thread:$0]  %s997_s4, 16, %s999_s5, [#allocation4]  }
 0x792   :  { %1562 = dma.done.wait [#allocation4], 16  }
 0x793   :  { %1563 = vsyncadd [#allocation4], 4294967280 }
 0x794   :  { %1006 = vsyncpa [#allocation3], 1 }
 0x795   :  { %1007 = vsyncpa [#allocation6], 1 }
 0x796   :  { %1008 = vsyncpa [#allocation9], 1 }
 0x797   :  { %1009 = vsyncpa [#allocation12], 1 }
 0x798   :  { %1010 = vsyncpa [#allocation15], 1 }
 0x799   :  { %1011 = vsyncpa [#allocation18], 1 }
 0x79a   :  { %1012 = vsyncpa [#allocation4], 1 }

</bundles_post_ra>
